<compile_context>
chip_gen: v6e
topology: v6e:2x2x1
jax: 0.10.0
libtpu: 0.0.40
codegen_flags: <defaults>
</compile_context>

<pallas_src>
import math
import functools

import jax
import jax.numpy as jnp
from jax import lax
from jax.experimental import pallas as pl
from jax.experimental.pallas import tpu as pltpu


# ----------------------------- "opt" configuration -----------------------------
class Opt:
    mse_loss = False          # -> FocalLoss for the heatmap
    reg_loss = 'l1'           # -> RegL1Loss for wh / off
    dense_wh = False
    norm_wh = False
    cat_spec_wh = False
    reg_offset = True
    num_stacks = 1
    hm_weight = 1.0
    wh_weight = 0.1
    off_weight = 1.0
    id_weight = 1.0
    color_weight = 0.0        # color head disabled
    ball_weight = 0.0         # ball head disabled
    reid_dim = 32
    nID = 64


# Transport dtype of the dominant heatmap streams.  jnp.float32 = exact parity
# with the PyTorch f32 reference; jnp.bfloat16 halves HBM bytes on the focal
# loop (big win on HBM-bound v5e/v6e) at ~3 decimal digits of drift in the
# (1-gt)^4 weights / sigmoid input.
HM_TRANSPORT_DTYPE = jnp.float32

# Largest heat-map row-block (TR, 128).  TR=2048 -> 1 MiB f32 block:
# 2 streams x 2 pipeline buffers + 2 accumulators ~= 6 MiB, well inside the
# 32 MiB scoped VMEM limit on every gen and v7x's 64 MiB physical VMEM.
_TR_MAX = 2048

_LOG_EPS = math.log(1e-4)
_LOG_1M_EPS = math.log(1.0 - 1e-4)

# output slots of the fused kernel
(_FOCAL, _NPOS, _WH_ABS, _WH_MSUM, _OFF_ABS, _OFF_MSUM, _ID_CE, _ID_CNT) = range(8)


# ------------------------------- fused Pallas kernel ----------------------------
def _fused_kernel(hm_ref, gt_ref, regp_ref, regt_ref, m_ref,
                  idh_ref, valid_ref, idt_ref, w_ref, b_ref,
                  out_ref, acc_ref, cnt_ref,
                  *, emb_scale, tr, r_valid, ragged):
    """Fused MotLoss partial sums.

    grid: 1-D over heatmap row-blocks ("arbitrary" reduction axis).
    out_ref (SMEM, (8,)): [focal_sum, num_pos,
                           wh_abs, wh_mask_sum, off_abs, off_mask_sum,
                           id_ce_sum, id_valid_count]
    acc/cnt: (TR,128) VMEM block-local accumulators (one cross-lane reduce at
    finalize instead of per-block reductions).
    """
    i = pl.program_id(0)
    nsteps = pl.num_programs(0)

    @pl.when(i == 0)
    def _():
        acc_ref[...] = jnp.zeros_like(acc_ref)
        cnt_ref[...] = jnp.zeros_like(cnt_ref)

        # ---- small heads at step 0: hide under the focal loop's DMA prefetch
        # (SMEM output block is resident, so these early writes persist). ----

        # wh / off masked L1, lane-dense (C, B*K) layout, both heads fused
        m = m_ref[...]                                          # (1, N)
        diff = jnp.abs(regp_ref[...] * m - regt_ref[...] * m)   # (4, N)
        msum2 = jnp.sum(m) * 2.0                                # mask expanded over 2 channels
        out_ref[_WH_ABS] = jnp.sum(diff[0:2, :])
        out_ref[_WH_MSUM] = msum2
        out_ref[_OFF_ABS] = jnp.sum(diff[2:4, :])
        out_ref[_OFF_MSUM] = msum2

        # id head: L2-normalize (rsqrt, emb_scale folded) -> linear -> weighted CE
        xf = idh_ref[...]                                       # (N, D) f32
        sumsq = jnp.sum(xf * xf, axis=-1, keepdims=True)
        xn = xf * (emb_scale * lax.rsqrt(jnp.maximum(sumsq, 1e-24)))
        logits = jnp.dot(xn, w_ref[...], preferred_element_type=jnp.float32) + b_ref[...]
        mmax = jnp.max(logits, axis=-1, keepdims=True)
        lse = mmax + jnp.log(jnp.sum(jnp.exp(logits - mmax), axis=-1, keepdims=True))
        cls = lax.broadcasted_iota(jnp.int32, logits.shape, 1)
        onehot = (cls == idt_ref[...]).astype(jnp.float32)
        picked = jnp.sum(logits * onehot, axis=-1, keepdims=True)
        ce = lse - picked                                       # (N, 1)
        v = valid_ref[...]                                      # (N, 1)
        out_ref[_ID_CE] = jnp.sum(ce * v)
        out_ref[_ID_CNT] = jnp.sum(v)

    # ---- focal-loss partials on this heatmap block (VPU + EUP) ----
    x = hm_ref[...].astype(jnp.float32)
    gt = gt_ref[...].astype(jnp.float32)
    if ragged:
        # mask rows of the ragged last block (static flag; no cost when aligned)
        row = i * tr + lax.broadcasted_iota(jnp.int32, x.shape, 0)
        inb = row < r_valid
        x = jnp.where(inb, x, 0.0)
        gt = jnp.where(inb, gt, 2.0)   # gt=2 -> pos = neg = 0 -> exactly zero term

    # softplus form: log(sigmoid(x)) = x - sp, log(1-sigmoid(x)) = -sp; the
    # 1e-4 clamp is applied in log space (monotone => identical to
    # clip(sigmoid(x), 1e-4, 1-1e-4)).  3 EUP pushes/elem (exp, log, exp)
    # instead of 4 (sigmoid + two logs).
    sp = jnp.maximum(x, 0.0) + jnp.log(1.0 + jnp.exp(-jnp.abs(x)))
    log_pred = jnp.clip(x - sp, _LOG_EPS, _LOG_1M_EPS)
    log_omp = jnp.clip(-sp, _LOG_EPS, _LOG_1M_EPS)
    pred = jnp.exp(log_pred)
    omp = 1.0 - pred
    pos = (gt == 1.0).astype(jnp.float32)
    neg = (gt < 1.0).astype(jnp.float32)
    t = 1.0 - gt
    t2 = t * t
    neg_w = t2 * t2                                            # (1-gt)^4 as two squares
    # merged pos+neg accumulator (exact: pos part is identically 0 when npos==0)
    acc_ref[...] += (log_pred * (omp * omp) * pos
                     + log_omp * (pred * pred) * neg_w * neg)
    cnt_ref[...] += pos
    # TODO(synk): if a bundle dump shows vld/vst pressure, shrink acc/cnt to a
    # single (8,128) vreg each via a per-block sublane reduce.

    @pl.when(i == nsteps - 1)
    def _():
        out_ref[_FOCAL] = jnp.sum(acc_ref[...])
        out_ref[_NPOS] = jnp.sum(cnt_ref[...])


# ------------------------------- JAX-side glue -----------------------------------
def _gather_feat_nchw(feat, ind):
    """(B,C,H,W), ind (B,K) -> (B,C,K); gathers K pixels per image without
    materializing a transposed copy of the full feature map."""
    B, C, H, W = feat.shape
    K = ind.shape[1]
    f = feat.reshape(B, C, H * W)
    idx = jnp.broadcast_to(ind[:, None, :].astype(jnp.int32), (B, C, K))
    return jnp.take_along_axis(f, idx, axis=2)


def mot_losses(hm_logits, hm_gt, wh_out, reg_out, id_out,
               reg_mask, ind, wh_gt, reg_gt, ids, W, b, emb_scale):
    """Runs the single fused Pallas kernel, returns (hm, wh, off, id) losses."""
    # ---- heatmap: view as lane-dense (R,128) rows.  No host-side pad copy
    # unless the element count is not a multiple of 128 (then pad minimally;
    # hm pad = 0, gt pad = 2.0 -> exactly zero focal contribution).
    n = hm_logits.size
    lane_pad = (-n) % 128
    if lane_pad:
        xflat = jnp.pad(hm_logits.reshape(-1), (0, lane_pad))
        gflat = jnp.pad(hm_gt.reshape(-1), (0, lane_pad), constant_values=2.0)
    else:
        xflat = hm_logits.reshape(-1)
        gflat = hm_gt.reshape(-1)
    R = (n + lane_pad) // 128
    x2 = xflat.reshape(R, 128).astype(HM_TRANSPORT_DTYPE)
    g2 = gflat.reshape(R, 128).astype(HM_TRANSPORT_DTYPE)

    if R <= _TR_MAX:
        TR = R                    # single block; "equals full dim" satisfies tiling
    else:
        TR = _TR_MAX              # multiple of 8/16; ragged tail masked in-kernel
    nblocks = int(pl.cdiv(R, TR))
    ragged = (R % TR) != 0

    # ---- per-detection heads: tiny (B,C,K) gathers (no full-map transpose) ----
    B, K = ind.shape
    N = B * K
    wh_pred = _gather_feat_nchw(wh_out, ind)    # (B, 2, K)
    rg_pred = _gather_feat_nchw(reg_out, ind)   # (B, 2, K)
    id_head = _gather_feat_nchw(id_out, ind)    # (B, D, K)
    D = id_head.shape[1]
    nID = W.shape[1]

    # lane-dense (C, B*K) layout; wh + off packed into one (4, N) operand
    regp = jnp.concatenate([wh_pred, rg_pred], axis=1)                    # (B, 4, K)
    regp = jnp.transpose(regp, (1, 0, 2)).reshape(4, N).astype(jnp.float32)
    regt = jnp.concatenate(
        [jnp.transpose(wh_gt, (2, 0, 1)).reshape(2, N),
         jnp.transpose(reg_gt, (2, 0, 1)).reshape(2, N)], axis=0).astype(jnp.float32)
    m2 = reg_mask.reshape(1, N).astype(jnp.float32)

    idh = jnp.transpose(id_head, (0, 2, 1)).reshape(N, D).astype(jnp.float32)
    idt = ids.reshape(N, 1).astype(jnp.int32)
    # boolean-mask select (data-dependent shape in PyTorch) -> equivalent weighting:
    # CrossEntropyLoss(ignore_index=-1) averages over rows with reg_mask>0 AND id != -1.
    valid = ((reg_mask.reshape(N, 1) > 0) & (idt != -1)).astype(jnp.float32)

    # pad nID -> multiple of 128 so logits / LSE / one-hot use full-lane vregs
    # (zero weight columns, -1e30 bias => padded classes contribute nothing).
    nid_pad = (-nID) % 128
    w32 = W.astype(jnp.float32)
    b32 = b.astype(jnp.float32)
    if nid_pad:
        w32 = jnp.pad(w32, ((0, 0), (0, nid_pad)))
        b32 = jnp.pad(b32, (0, nid_pad), constant_values=-1e30)
    nid_p = nID + nid_pad
    b2 = b32.reshape(1, nid_p)

    hm_spec = pl.BlockSpec((TR, 128), lambda i: (i, 0))

    def full(arr):
        # resident across all grid steps, fetched once.
        # TODO(synk): pipeline_mode=pl.Buffered(1) would drop the second buffer
        # for these invariant blocks at production N/D/nID sizes.
        return pl.BlockSpec(arr.shape, lambda i: (0, 0))

    cost = pl.CostEstimate(
        flops=int(16 * R * 128 + 2 * N * D * nid_p + 8 * N * nid_p + 6 * N * D + 40 * N),
        transcendentals=int(3 * R * 128 + N * nid_p + 2 * N),
        bytes_accessed=int(2 * R * 128 * x2.dtype.itemsize
                           + 4 * (10 * N + N * D + D * nid_p + nid_p + 8)),
    )

    # TODO(synk): on v7x, split the row-blocks across both TensorCores with a
    # leading "parallel" grid axis and per-core partial-sum outputs.
    sums = pl.pallas_call(
        functools.partial(_fused_kernel, emb_scale=emb_scale,
                          tr=TR, r_valid=R, ragged=ragged),
        out_shape=jax.ShapeDtypeStruct((8,), jnp.float32),
        grid=(nblocks,),
        in_specs=[hm_spec, hm_spec,
                  full(regp), full(regt), full(m2),
                  full(idh), full(valid), full(idt),
                  full(w32), full(b2)],
        out_specs=pl.BlockSpec(memory_space=pltpu.MemorySpace.SMEM),
        scratch_shapes=[pltpu.VMEM((TR, 128), jnp.float32),
                        pltpu.VMEM((TR, 128), jnp.float32)],
        compiler_params=pltpu.CompilerParams(
            dimension_semantics=("arbitrary",),
            vmem_limit_bytes=32 * 1024 * 1024),
        cost_estimate=cost,
    )(x2, g2, regp, regt, m2, idh, valid, idt, w32, b2)

    focal_s, npos = sums[_FOCAL], sums[_NPOS]
    # -(pos+neg)/max(npos,1): exact also when npos==0 (pos part is exactly 0).
    hm_loss = -focal_s / jnp.maximum(npos, 1.0)
    wh_loss = sums[_WH_ABS] / (sums[_WH_MSUM] + 1e-4)
    off_loss = sums[_OFF_ABS] / (sums[_OFF_MSUM] + 1e-4)
    id_cnt = sums[_ID_CNT]
    id_loss = jnp.where(id_cnt > 0, sums[_ID_CE] / jnp.maximum(id_cnt, 1.0), 0.0)
    return hm_loss, wh_loss, off_loss, id_loss


# ------------------------------- MotLoss wrapper --------------------------------
class MotLossJAX:
    def __init__(self, opt, key):
        self.opt = opt
        self.emb_dim = opt.reid_dim
        self.nID = opt.nID
        k1, k2 = jax.random.split(key)
        bound = 1.0 / math.sqrt(self.emb_dim)
        # nn.Linear(emb_dim, nID) parameters, deterministic init
        self.W = jax.random.uniform(k1, (self.emb_dim, self.nID), jnp.float32, -bound, bound)
        self.b = jax.random.uniform(k2, (self.nID,), jnp.float32, -bound, bound)
        self.emb_scale = math.sqrt(2.0) * math.log(self.nID - 1)
        self.s_det = jnp.float32(-1.85)
        self.s_id = jnp.float32(-1.05)
        # TODO(synk): color/ball heads not instantiated (opt.color_weight == opt.ball_weight == 0)
        # TODO(synk): forward-only; a custom_vjp (or pure-JAX backward) is needed for training.

    def __call__(self, outputs, batch):
        opt = self.opt
        hm_loss = wh_loss = off_loss = id_loss = jnp.float32(0.0)
        for s in range(opt.num_stacks):
            output = outputs[s]
            # single fused pallas_call per stack (focal + wh-L1 + off-L1 + id-CE)
            hm_l, wh_l, off_l, id_l = mot_losses(
                output['hm'], batch['hm'], output['wh'], output['reg'], output['id'],
                batch['reg_mask'], batch['ind'], batch['wh'], batch['reg'], batch['ids'],
                self.W, self.b, self.emb_scale)
            hm_loss = hm_loss + hm_l / opt.num_stacks
            if opt.wh_weight > 0:
                wh_loss = wh_loss + wh_l / opt.num_stacks
            if opt.reg_offset and opt.off_weight > 0:
                off_loss = off_loss + off_l / opt.num_stacks
            if opt.id_weight > 0:
                id_loss = id_loss + id_l
        det_loss = opt.hm_weight * hm_loss + opt.wh_weight * wh_loss + opt.off_weight * off_loss
        loss = (jnp.exp(-self.s_det) * det_loss + jnp.exp(-self.s_id) * id_loss
                + (self.s_det + self.s_id))
        loss = loss * 0.5
        loss_stats = {'loss': loss, 'hm_loss': hm_loss, 'wh_loss': wh_loss,
                      'off_loss': off_loss, 'id_loss': id_loss}
        return loss, loss_stats


# ------------------------------------ main --------------------------------------
if __name__ == "__main__":
    opt = Opt()
    B, H, W = 2, 16, 16
    NUM_CLASSES = 1
    K = 8

    key = jax.random.PRNGKey(0)
    keys = jax.random.split(key, 12)

    # network outputs (NCHW, pre-sigmoid logits for 'hm')
    hm_out = jax.random.normal(keys[0], (B, NUM_CLASSES, H, W), jnp.float32)
    wh_out = jax.random.normal(keys[1], (B, 2, H, W), jnp.float32)
    reg_out = jax.random.normal(keys[2], (B, 2, H, W), jnp.float32) * 0.1
    id_out = jax.random.normal(keys[3], (B, opt.reid_dim, H, W), jnp.float32)

    # ground-truth batch
    hm_gt = jax.random.uniform(keys[4], (B, NUM_CLASSES, H, W), jnp.float32, 0.0, 0.9)
    # plant a few exact-1.0 peaks so num_pos > 0
    hm_gt = hm_gt.at[:, 0, 4, 4].set(1.0).at[:, 0, 10, 12].set(1.0)

    ind = jax.random.randint(keys[5], (B, K), 0, H * W, jnp.int32)
    reg_mask = jnp.concatenate(
        [jnp.ones((B, 5), jnp.float32), jnp.zeros((B, K - 5), jnp.float32)], axis=1)
    wh_gt = jax.random.uniform(keys[6], (B, K, 2), jnp.float32, 1.0, 8.0)
    reg_gt = jax.random.uniform(keys[7], (B, K, 2), jnp.float32, 0.0, 1.0)
    ids = jax.random.randint(keys[8], (B, K), 0, opt.nID, jnp.int32)
    ids = ids.at[:, 1].set(-1)   # exercise ignore_index=-1

    outputs = [{'hm': hm_out, 'wh': wh_out, 'reg': reg_out, 'id': id_out}]
    batch = {'hm': hm_gt, 'reg_mask': reg_mask, 'ind': ind,
             'wh': wh_gt, 'reg': reg_gt, 'ids': ids}

    mot_loss = MotLossJAX(opt, keys[9])
    loss, stats = mot_loss(outputs, batch)
    loss = jax.block_until_ready(loss)
    for v in stats.values():
        jax.block_until_ready(v)
    assert jnp.isfinite(loss), "loss is not finite"
    print("KERNEL_OK")
</pallas_src>

<mosaic_0001>
module attributes {stable_mosaic.version = 11 : i64} {
  func.func @_fused_kernel(%arg0: i32, %arg1: memref<4x128xf32, #tpu.memory_space<vmem>>, %arg2: memref<4x128xf32, #tpu.memory_space<vmem>>, %arg3: memref<4x16xf32, #tpu.memory_space<vmem>>, %arg4: memref<4x16xf32, #tpu.memory_space<vmem>>, %arg5: memref<1x16xf32, #tpu.memory_space<vmem>>, %arg6: memref<16x32xf32, #tpu.memory_space<vmem>>, %arg7: memref<16x1xf32, #tpu.memory_space<vmem>>, %arg8: memref<16x1xi32, #tpu.memory_space<vmem>>, %arg9: memref<32x128xf32, #tpu.memory_space<vmem>>, %arg10: memref<1x128xf32, #tpu.memory_space<vmem>>, %arg11: memref<8xf32, #tpu.memory_space<smem>>, %arg12: memref<4x128xf32, #tpu.memory_space<vmem>>, %arg13: memref<4x128xf32, #tpu.memory_space<vmem>>) attributes {dimension_semantics = [#tpu.dimension_semantics<arbitrary>], iteration_bounds = array<i64: 1>, scalar_prefetch = 0 : i64, scratch_operands = 2 : i64, tpu.core_type = #tpu.core_type<tc>, window_params = [{transform_indices = @transform_0, window_bounds = array<i64: 4, 128>}, {transform_indices = @transform_1, window_bounds = array<i64: 4, 128>}, {pipeline_mode = #tpu.pipeline_mode<synchronous>, transform_indices = @transform_2, window_bounds = array<i64: 4, 16>}, {pipeline_mode = #tpu.pipeline_mode<synchronous>, transform_indices = @transform_3, window_bounds = array<i64: 4, 16>}, {pipeline_mode = #tpu.pipeline_mode<synchronous>, transform_indices = @transform_4, window_bounds = array<i64: 1, 16>}, {pipeline_mode = #tpu.pipeline_mode<synchronous>, transform_indices = @transform_5, window_bounds = array<i64: 16, 32>}, {pipeline_mode = #tpu.pipeline_mode<synchronous>, transform_indices = @transform_6, window_bounds = array<i64: 16, 1>}, {pipeline_mode = #tpu.pipeline_mode<synchronous>, transform_indices = @transform_7, window_bounds = array<i64: 16, 1>}, {pipeline_mode = #tpu.pipeline_mode<synchronous>, transform_indices = @transform_8, window_bounds = array<i64: 32, 128>}, {pipeline_mode = #tpu.pipeline_mode<synchronous>, transform_indices = @transform_9, window_bounds = array<i64: 1, 128>}, {transform_indices = @transform_10, window_bounds = array<i64: 8>}]} {
    %c0_i32 = arith.constant 0 : i32
    %0 = arith.cmpi eq, %arg0, %c0_i32 : i32
    %1 = arith.extui %0 : i1 to i32
    %c0_i32_0 = arith.constant 0 : i32
    %2 = arith.cmpi ne, %1, %c0_i32_0 : i32
    scf.if %2 {
      %cst_25 = arith.constant 0.000000e+00 : f32
      %58 = vector.broadcast %cst_25 : f32 to vector<4x128xf32>
      %c0_26 = arith.constant 0 : index
      %c0_27 = arith.constant 0 : index
      %59 = vector.load %arg12[%c0_26, %c0_27] : memref<4x128xf32, #tpu.memory_space<vmem>>, vector<4x128xf32>
      tpu.vector_store %arg12[%c0_26, %c0_27], %58 {strides = array<i32>} : memref<4x128xf32, #tpu.memory_space<vmem>>, vector<4x128xf32>,
      %cst_28 = arith.constant 0.000000e+00 : f32
      %60 = vector.broadcast %cst_28 : f32 to vector<4x128xf32>
      %c0_29 = arith.constant 0 : index
      %c0_30 = arith.constant 0 : index
      %61 = vector.load %arg13[%c0_29, %c0_30] : memref<4x128xf32, #tpu.memory_space<vmem>>, vector<4x128xf32>
      tpu.vector_store %arg13[%c0_29, %c0_30], %60 {strides = array<i32>} : memref<4x128xf32, #tpu.memory_space<vmem>>, vector<4x128xf32>,
      %c0_31 = arith.constant 0 : index
      %c0_32 = arith.constant 0 : index
      %62 = vector.load %arg5[%c0_31, %c0_32] : memref<1x16xf32, #tpu.memory_space<vmem>>, vector<1x16xf32>
      %c0_33 = arith.constant 0 : index
      %c0_34 = arith.constant 0 : index
      %63 = vector.load %arg3[%c0_33, %c0_34] : memref<4x16xf32, #tpu.memory_space<vmem>>, vector<4x16xf32>
      %64 = vector.broadcast %62 : vector<1x16xf32> to vector<4x16xf32>
      %65 = arith.mulf %63, %64 : vector<4x16xf32>
      %c0_35 = arith.constant 0 : index
      %c0_36 = arith.constant 0 : index
      %66 = vector.load %arg4[%c0_35, %c0_36] : memref<4x16xf32, #tpu.memory_space<vmem>>, vector<4x16xf32>
      %67 = vector.broadcast %62 : vector<1x16xf32> to vector<4x16xf32>
      %68 = arith.mulf %66, %67 : vector<4x16xf32>
      %69 = arith.subf %65, %68 : vector<4x16xf32>
      %70 = math.absf %69 : vector<4x16xf32>
      %71 = vector.shape_cast %62 : vector<1x16xf32> to vector<1x1x16xf32>
      %cst_37 = arith.constant dense<0.000000e+00> : vector<1xf32>
      %72 = vector.multi_reduction <add>, %71, %cst_37 [1, 2] : vector<1x1x16xf32> to vector<1xf32>
      %73 = vector.shape_cast %72 : vector<1xf32> to vector<1x1x1xf32>
      %74 = vector.extract %73[0, 0, 0] : f32 from vector<1x1x1xf32>
      %cst_38 = arith.constant 2.000000e+00 : f32
      %75 = arith.mulf %74, %cst_38 : f32
      %76 = vector.extract_strided_slice %70 {offsets = [0, 0], sizes = [2, 16], strides = [1, 1]} : vector<4x16xf32> to vector<2x16xf32>
      %77 = vector.shape_cast %76 : vector<2x16xf32> to vector<1x2x16xf32>
      %cst_39 = arith.constant dense<0.000000e+00> : vector<1xf32>
      %78 = vector.multi_reduction <add>, %77, %cst_39 [1, 2] : vector<1x2x16xf32> to vector<1xf32>
      %79 = vector.shape_cast %78 : vector<1xf32> to vector<1x1x1xf32>
      %80 = vector.extract %79[0, 0, 0] : f32 from vector<1x1x1xf32>
      %c2 = arith.constant 2 : index
      %81 = memref.load %arg11[%c2] : memref<8xf32, #tpu.memory_space<smem>>
      memref.store %80, %arg11[%c2] : memref<8xf32, #tpu.memory_space<smem>>
      %c3 = arith.constant 3 : index
      %82 = memref.load %arg11[%c3] : memref<8xf32, #tpu.memory_space<smem>>
      memref.store %75, %arg11[%c3] : memref<8xf32, #tpu.memory_space<smem>>
      %83 = vector.extract_strided_slice %70 {offsets = [2, 0], sizes = [2, 16], strides = [1, 1]} : vector<4x16xf32> to vector<2x16xf32>
      %84 = vector.shape_cast %83 : vector<2x16xf32> to vector<1x2x16xf32>
      %cst_40 = arith.constant dense<0.000000e+00> : vector<1xf32>
      %85 = vector.multi_reduction <add>, %84, %cst_40 [1, 2] : vector<1x2x16xf32> to vector<1xf32>
      %86 = vector.shape_cast %85 : vector<1xf32> to vector<1x1x1xf32>
      %87 = vector.extract %86[0, 0, 0] : f32 from vector<1x1x1xf32>
      %c4 = arith.constant 4 : index
      %88 = memref.load %arg11[%c4] : memref<8xf32, #tpu.memory_space<smem>>
      memref.store %87, %arg11[%c4] : memref<8xf32, #tpu.memory_space<smem>>
      %c5 = arith.constant 5 : index
      %89 = memref.load %arg11[%c5] : memref<8xf32, #tpu.memory_space<smem>>
      memref.store %75, %arg11[%c5] : memref<8xf32, #tpu.memory_space<smem>>
      %c0_41 = arith.constant 0 : index
      %c0_42 = arith.constant 0 : index
      %90 = vector.load %arg6[%c0_41, %c0_42] : memref<16x32xf32, #tpu.memory_space<vmem>>, vector<16x32xf32>
      %91 = arith.mulf %90, %90 : vector<16x32xf32>
      %cst_43 = arith.constant dense<0.000000e+00> : vector<16xf32>
      %92 = vector.multi_reduction <add>, %91, %cst_43 [1] : vector<16x32xf32> to vector<16xf32>
      %93 = vector.shape_cast %92 : vector<16xf32> to vector<16x1xf32>
      %cst_44 = arith.constant 1.000000e-24 : f32
      %94 = vector.broadcast %cst_44 : f32 to vector<16x1xf32>
      %95 = arith.maximumf %93, %94 : vector<16x1xf32>
      %96 = math.rsqrt %95 : vector<16x1xf32>
      %cst_45 = arith.constant 5.85927725 : f32
      %97 = vector.broadcast %cst_45 : f32 to vector<16x1xf32>
      %98 = arith.mulf %97, %96 : vector<16x1xf32>
      %99 = vector.broadcast %98 : vector<16x1xf32> to vector<16x32xf32>
      %100 = arith.mulf %90, %99 : vector<16x32xf32>
      %c0_46 = arith.constant 0 : index
      %c0_47 = arith.constant 0 : index
      %101 = vector.load %arg9[%c0_46, %c0_47] : memref<32x128xf32, #tpu.memory_space<vmem>>, vector<32x128xf32>
      %cst_48 = arith.constant dense<0.000000e+00> : vector<16x128xf32>
      %102 = tpu.matmul %100, %101, %cst_48 {dimension_numbers = #tpu.dot_dimension_numbers<[1], [0], [0], [1], [0, 0, 1, 1], [], []>} : vector<16x32xf32>, vector<32x128xf32>, vector<16x128xf32> -> vector<16x128xf32>
      %c0_49 = arith.constant 0 : index
      %c0_50 = arith.constant 0 : index
      %103 = vector.load %arg10[%c0_49, %c0_50] : memref<1x128xf32, #tpu.memory_space<vmem>>, vector<1x128xf32>
      %104 = vector.broadcast %103 : vector<1x128xf32> to vector<16x128xf32>
      %105 = arith.addf %102, %104 : vector<16x128xf32>
      %cst_51 = arith.constant dense<0xFF800000> : vector<16xf32>
      %106 = vector.multi_reduction <maximumf>, %105, %cst_51 [1] : vector<16x128xf32> to vector<16xf32>
      %107 = vector.shape_cast %106 : vector<16xf32> to vector<16x1xf32>
      %108 = vector.broadcast %107 : vector<16x1xf32> to vector<16x128xf32>
      %109 = arith.subf %105, %108 : vector<16x128xf32>
      %110 = math.exp %109 : vector<16x128xf32>
      %cst_52 = arith.constant dense<0.000000e+00> : vector<16xf32>
      %111 = vector.multi_reduction <add>, %110, %cst_52 [1] : vector<16x128xf32> to vector<16xf32>
      %112 = vector.shape_cast %111 : vector<16xf32> to vector<16x1xf32>
      %113 = math.log %112 : vector<16x1xf32>
      %114 = arith.addf %107, %113 : vector<16x1xf32>
      %115 = tpu.iota {dimensions = array<i32: 1>} : vector<16x128xi32>
      %c0_53 = arith.constant 0 : index
      %c0_54 = arith.constant 0 : index
      %116 = vector.load %arg8[%c0_53, %c0_54] : memref<16x1xi32, #tpu.memory_space<vmem>>, vector<16x1xi32>
      %117 = vector.broadcast %116 : vector<16x1xi32> to vector<16x128xi32>
      %118 = arith.cmpi eq, %115, %117 : vector<16x128xi32>
      %119 = arith.extui %118 : vector<16x128xi1> to vector<16x128xi32>
      %120 = arith.sitofp %119 : vector<16x128xi32> to vector<16x128xf32>
      %121 = arith.mulf %105, %120 : vector<16x128xf32>
      %cst_55 = arith.constant dense<0.000000e+00> : vector<16xf32>
      %122 = vector.multi_reduction <add>, %121, %cst_55 [1] : vector<16x128xf32> to vector<16xf32>
      %123 = vector.shape_cast %122 : vector<16xf32> to vector<16x1xf32>
      %124 = arith.subf %114, %123 : vector<16x1xf32>
      %c0_56 = arith.constant 0 : index
      %c0_57 = arith.constant 0 : index
      %125 = vector.load %arg7[%c0_56, %c0_57] : memref<16x1xf32, #tpu.memory_space<vmem>>, vector<16x1xf32>
      %126 = arith.mulf %124, %125 : vector<16x1xf32>
      %127 = vector.shape_cast %126 : vector<16x1xf32> to vector<1x16x1xf32>
      %cst_58 = arith.constant dense<0.000000e+00> : vector<1xf32>
      %128 = vector.multi_reduction <add>, %127, %cst_58 [1, 2] : vector<1x16x1xf32> to vector<1xf32>
      %129 = vector.shape_cast %128 : vector<1xf32> to vector<1x1x1xf32>
      %130 = vector.extract %129[0, 0, 0] : f32 from vector<1x1x1xf32>
      %c6 = arith.constant 6 : index
      %131 = memref.load %arg11[%c6] : memref<8xf32, #tpu.memory_space<smem>>
      memref.store %130, %arg11[%c6] : memref<8xf32, #tpu.memory_space<smem>>
      %132 = vector.shape_cast %125 : vector<16x1xf32> to vector<1x16x1xf32>
      %cst_59 = arith.constant dense<0.000000e+00> : vector<1xf32>
      %133 = vector.multi_reduction <add>, %132, %cst_59 [1, 2] : vector<1x16x1xf32> to vector<1xf32>
      %134 = vector.shape_cast %133 : vector<1xf32> to vector<1x1x1xf32>
      %135 = vector.extract %134[0, 0, 0] : f32 from vector<1x1x1xf32>
      %c7 = arith.constant 7 : index
      %136 = memref.load %arg11[%c7] : memref<8xf32, #tpu.memory_space<smem>>
      memref.store %135, %arg11[%c7] : memref<8xf32, #tpu.memory_space<smem>>
    } else {
    }
    %c0 = arith.constant 0 : index
    %c0_1 = arith.constant 0 : index
    %3 = vector.load %arg1[%c0, %c0_1] : memref<4x128xf32, #tpu.memory_space<vmem>>, vector<4x128xf32>
    %c0_2 = arith.constant 0 : index
    %c0_3 = arith.constant 0 : index
    %4 = vector.load %arg2[%c0_2, %c0_3] : memref<4x128xf32, #tpu.memory_space<vmem>>, vector<4x128xf32>
    %cst = arith.constant 0.000000e+00 : f32
    %5 = vector.broadcast %cst : f32 to vector<4x128xf32>
    %6 = arith.maximumf %3, %5 : vector<4x128xf32>
    %7 = math.absf %3 : vector<4x128xf32>
    %cst_4 = arith.constant 0.000000e+00 : f32
    %8 = vector.broadcast %cst_4 : f32 to vector<4x128xf32>
    %9 = arith.subf %8, %7 : vector<4x128xf32>
    %10 = math.exp %9 : vector<4x128xf32>
    %cst_5 = arith.constant 1.000000e+00 : f32
    %11 = vector.broadcast %cst_5 : f32 to vector<4x128xf32>
    %12 = arith.addf %11, %10 : vector<4x128xf32>
    %13 = math.log %12 : vector<4x128xf32>
    %14 = arith.addf %6, %13 : vector<4x128xf32>
    %15 = arith.subf %3, %14 : vector<4x128xf32>
    %cst_6 = arith.constant -9.21034049 : f32
    %cst_7 = arith.constant -1.000050e-04 : f32
    %16 = vector.broadcast %cst_6 : f32 to vector<4x128xf32>
    %17 = arith.maximumf %16, %15 : vector<4x128xf32>
    %18 = vector.broadcast %cst_7 : f32 to vector<4x128xf32>
    %19 = arith.minimumf %18, %17 : vector<4x128xf32>
    %cst_8 = arith.constant 0.000000e+00 : f32
    %20 = vector.broadcast %cst_8 : f32 to vector<4x128xf32>
    %21 = arith.subf %20, %14 : vector<4x128xf32>
    %cst_9 = arith.constant -9.21034049 : f32
    %cst_10 = arith.constant -1.000050e-04 : f32
    %22 = vector.broadcast %cst_9 : f32 to vector<4x128xf32>
    %23 = arith.maximumf %22, %21 : vector<4x128xf32>
    %24 = vector.broadcast %cst_10 : f32 to vector<4x128xf32>
    %25 = arith.minimumf %24, %23 : vector<4x128xf32>
    %26 = math.exp %19 : vector<4x128xf32>
    %cst_11 = arith.constant 1.000000e+00 : f32
    %27 = vector.broadcast %cst_11 : f32 to vector<4x128xf32>
    %28 = arith.subf %27, %26 : vector<4x128xf32>
    %cst_12 = arith.constant 1.000000e+00 : f32
    %29 = vector.broadcast %cst_12 : f32 to vector<4x128xf32>
    %30 = arith.cmpf oeq, %4, %29 : vector<4x128xf32>
    %31 = arith.extui %30 : vector<4x128xi1> to vector<4x128xi32>
    %32 = arith.sitofp %31 : vector<4x128xi32> to vector<4x128xf32>
    %cst_13 = arith.constant 1.000000e+00 : f32
    %33 = vector.broadcast %cst_13 : f32 to vector<4x128xf32>
    %34 = arith.cmpf olt, %4, %33 : vector<4x128xf32>
    %35 = arith.extui %34 : vector<4x128xi1> to vector<4x128xi32>
    %36 = arith.sitofp %35 : vector<4x128xi32> to vector<4x128xf32>
    %cst_14 = arith.constant 1.000000e+00 : f32
    %37 = vector.broadcast %cst_14 : f32 to vector<4x128xf32>
    %38 = arith.subf %37, %4 : vector<4x128xf32>
    %39 = arith.mulf %38, %38 : vector<4x128xf32>
    %40 = arith.mulf %39, %39 : vector<4x128xf32>
    %c0_15 = arith.constant 0 : index
    %c0_16 = arith.constant 0 : index
    %41 = vector.load %arg12[%c0_15, %c0_16] : memref<4x128xf32, #tpu.memory_space<vmem>>, vector<4x128xf32>
    %42 = arith.mulf %28, %28 : vector<4x128xf32>
    %43 = arith.mulf %19, %42 : vector<4x128xf32>
    %44 = arith.mulf %43, %32 : vector<4x128xf32>
    %45 = arith.mulf %26, %26 : vector<4x128xf32>
    %46 = arith.mulf %25, %45 : vector<4x128xf32>
    %47 = arith.mulf %46, %40 : vector<4x128xf32>
    %48 = arith.mulf %47, %36 : vector<4x128xf32>
    %49 = arith.addf %44, %48 : vector<4x128xf32>
    %50 = arith.addf %41, %49 : vector<4x128xf32>
    %c0_17 = arith.constant 0 : index
    %c0_18 = arith.constant 0 : index
    %51 = vector.load %arg12[%c0_17, %c0_18] : memref<4x128xf32, #tpu.memory_space<vmem>>, vector<4x128xf32>
    tpu.vector_store %arg12[%c0_17, %c0_18], %50 {strides = array<i32>} : memref<4x128xf32, #tpu.memory_space<vmem>>, vector<4x128xf32>,
    %c0_19 = arith.constant 0 : index
    %c0_20 = arith.constant 0 : index
    %52 = vector.load %arg13[%c0_19, %c0_20] : memref<4x128xf32, #tpu.memory_space<vmem>>, vector<4x128xf32>
    %53 = arith.addf %52, %32 : vector<4x128xf32>
    %c0_21 = arith.constant 0 : index
    %c0_22 = arith.constant 0 : index
    %54 = vector.load %arg13[%c0_21, %c0_22] : memref<4x128xf32, #tpu.memory_space<vmem>>, vector<4x128xf32>
    tpu.vector_store %arg13[%c0_21, %c0_22], %53 {strides = array<i32>} : memref<4x128xf32, #tpu.memory_space<vmem>>, vector<4x128xf32>,
    %c0_i32_23 = arith.constant 0 : i32
    %55 = arith.cmpi eq, %arg0, %c0_i32_23 : i32
    %56 = arith.extui %55 : i1 to i32
    %c0_i32_24 = arith.constant 0 : i32
    %57 = arith.cmpi ne, %56, %c0_i32_24 : i32
    scf.if %57 {
      %c0_25 = arith.constant 0 : index
      %c0_26 = arith.constant 0 : index
      %58 = vector.load %arg12[%c0_25, %c0_26] : memref<4x128xf32, #tpu.memory_space<vmem>>, vector<4x128xf32>
      %59 = vector.shape_cast %58 : vector<4x128xf32> to vector<1x4x128xf32>
      %cst_27 = arith.constant dense<0.000000e+00> : vector<1xf32>
      %60 = vector.multi_reduction <add>, %59, %cst_27 [1, 2] : vector<1x4x128xf32> to vector<1xf32>
      %61 = vector.shape_cast %60 : vector<1xf32> to vector<1x1x1xf32>
      %62 = vector.extract %61[0, 0, 0] : f32 from vector<1x1x1xf32>
      %c0_28 = arith.constant 0 : index
      %63 = memref.load %arg11[%c0_28] : memref<8xf32, #tpu.memory_space<smem>>
      memref.store %62, %arg11[%c0_28] : memref<8xf32, #tpu.memory_space<smem>>
      %c0_29 = arith.constant 0 : index
      %c0_30 = arith.constant 0 : index
      %64 = vector.load %arg13[%c0_29, %c0_30] : memref<4x128xf32, #tpu.memory_space<vmem>>, vector<4x128xf32>
      %65 = vector.shape_cast %64 : vector<4x128xf32> to vector<1x4x128xf32>
      %cst_31 = arith.constant dense<0.000000e+00> : vector<1xf32>
      %66 = vector.multi_reduction <add>, %65, %cst_31 [1, 2] : vector<1x4x128xf32> to vector<1xf32>
      %67 = vector.shape_cast %66 : vector<1xf32> to vector<1x1x1xf32>
      %68 = vector.extract %67[0, 0, 0] : f32 from vector<1x1x1xf32>
      %c1 = arith.constant 1 : index
      %69 = memref.load %arg11[%c1] : memref<8xf32, #tpu.memory_space<smem>>
      memref.store %68, %arg11[%c1] : memref<8xf32, #tpu.memory_space<smem>>
    } else {
    }
    return
  }
  func.func @transform_0(%arg0: i32) -> (i32, i32) {
    %c0_i32 = arith.constant 0 : i32
    %c0_i32_0 = arith.constant 0 : i32
    return %arg0, %c0_i32 : i32, i32
  }
  func.func @transform_1(%arg0: i32) -> (i32, i32) {
    %c0_i32 = arith.constant 0 : i32
    %c0_i32_0 = arith.constant 0 : i32
    return %arg0, %c0_i32 : i32, i32
  }
  func.func @transform_2(%arg0: i32) -> (i32, i32) {
    %c0_i32 = arith.constant 0 : i32
    %c0_i32_0 = arith.constant 0 : i32
    %c0_i32_1 = arith.constant 0 : i32
    return %c0_i32, %c0_i32_0 : i32, i32
  }
  func.func @transform_3(%arg0: i32) -> (i32, i32) {
    %c0_i32 = arith.constant 0 : i32
    %c0_i32_0 = arith.constant 0 : i32
    %c0_i32_1 = arith.constant 0 : i32
    return %c0_i32, %c0_i32_0 : i32, i32
  }
  func.func @transform_4(%arg0: i32) -> (i32, i32) {
    %c0_i32 = arith.constant 0 : i32
    %c0_i32_0 = arith.constant 0 : i32
    %c0_i32_1 = arith.constant 0 : i32
    return %c0_i32, %c0_i32_0 : i32, i32
  }
  func.func @transform_5(%arg0: i32) -> (i32, i32) {
    %c0_i32 = arith.constant 0 : i32
    %c0_i32_0 = arith.constant 0 : i32
    %c0_i32_1 = arith.constant 0 : i32
    return %c0_i32, %c0_i32_0 : i32, i32
  }
  func.func @transform_6(%arg0: i32) -> (i32, i32) {
    %c0_i32 = arith.constant 0 : i32
    %c0_i32_0 = arith.constant 0 : i32
    %c0_i32_1 = arith.constant 0 : i32
    return %c0_i32, %c0_i32_0 : i32, i32
  }
  func.func @transform_7(%arg0: i32) -> (i32, i32) {
    %c0_i32 = arith.constant 0 : i32
    %c0_i32_0 = arith.constant 0 : i32
    %c0_i32_1 = arith.constant 0 : i32
    return %c0_i32, %c0_i32_0 : i32, i32
  }
  func.func @transform_8(%arg0: i32) -> (i32, i32) {
    %c0_i32 = arith.constant 0 : i32
    %c0_i32_0 = arith.constant 0 : i32
    %c0_i32_1 = arith.constant 0 : i32
    return %c0_i32, %c0_i32_0 : i32, i32
  }
  func.func @transform_9(%arg0: i32) -> (i32, i32) {
    %c0_i32 = arith.constant 0 : i32
    %c0_i32_0 = arith.constant 0 : i32
    %c0_i32_1 = arith.constant 0 : i32
    return %c0_i32, %c0_i32_0 : i32, i32
  }
  func.func @transform_10(%arg0: i32) -> i32 {
    %c0_i32 = arith.constant 0 : i32
    %c0_i32_0 = arith.constant 0 : i32
    return %c0_i32 : i32
  }
}

</mosaic_0001>

<bundles_post_ra>
// kernel: tpu_custom_call.1
= control target key start
LH: loop header
LB: loop body
LE: loop exit
PB: predicated region body
PF: predicated region fallthrough
CT: control target
= control target key end

     0   :  { %15 = vsyncpa [#allocation5], 0  ;;  %s750_s0 = inlined_call_operand.hbm [shape: f32[4,128], index: 0, kind: input, shape index: {}]   ;;  %s751_s1 = inlined_call_operand.hbm [shape: f32[4,128], index: 1, kind: input, shape index: {}]   ;;  %s752_s2 = inlined_call_operand.hbm [shape: f32[4,16], index: 2, kind: input, shape index: {}]   ;;  %s753_s3 = inlined_call_operand.hbm [shape: f32[4,16], index: 3, kind: input, shape index: {}]   ;;  %s754_s4 = inlined_call_operand.hbm [shape: f32[1,16], index: 4, kind: input, shape index: {}]   ;;  %s755_s5 = inlined_call_operand.vmem [shape: f32[16,32], index: 5, kind: input, shape index: {}]   ;;  %s756_s6 = inlined_call_operand.vmem [shape: f32[16,1], index: 6, kind: input, shape index: {}]   ;;  %s757_s7 = inlined_call_operand.vmem [shape: s32[16,1], index: 7, kind: input, shape index: {}]   ;;  %s758_s8 = inlined_call_operand.vmem [shape: f32[32,128], index: 8, kind: input, shape index: {}]   ;;  %s759_s9 = inlined_call_operand.vmem [shape: f32[1,128], index: 9, kind: input, shape index: {}]   ;;  %s760_s10 = inlined_call_operand.hbm [shape: f32[8], index: 10, kind: output, shape index: {}]  }
   0x1   :  { %16 = vsyncpa [#allocation8], 0 }
   0x2   :  { %17 = vsyncpa [#allocation11], 0 }
   0x3   :  { %18 = vsyncpa [#allocation6], 0  ;;  %s616_s13 = smov [#allocation7]   ;;  %s617_s15 = smov [#allocation10]  }
   0x4   :  { %s35_s14 = sshll.u32 %s616_s13, 4  ;;  %s55_s16 = sshll.u32 %s617_s15, 4  ;;  %s36_s14 = int_to_ptr.vmem [resolvable:$true] %s35_s14  ;;  %s56_s16 = int_to_ptr.vmem [resolvable:$true] %s55_s16 }
   0x5   :  { %s508_s17 = scalar_lea.vmem %s36_s14, 64  ;;  %p513_p1 = scmp.lt.s32.totalorder %s36_s14, %s36_s14 }
   0x6   :  { %p509_p0 = scmp.ne.s32.totalorder %s36_s14, %s508_s17  ;;  %p514_p2 = scmp.lt.s32.totalorder %s508_s17, %s508_s17 }
   0x8   :  { %p515_p3 = por %p514_p2, %p513_p1 }
   0xa   :  { %p516_p4 = pnand %p515_p3, %p509_p0 }
   0xc   :  { %519 = shalt.err (!%p516_p4)
}
   0xd   :  { %38 = dma.hbm_to_vmem [thread:$0]  %s751_s1, 64, %s36_s14, [#allocation8]  }
   0xe   :  { %s528_s20 = scalar_lea.vmem %s56_s16, 64  ;;  %p533_p6 = scmp.lt.s32.totalorder %s56_s16, %s56_s16 }
   0xf   :  { %p529_p5 = scmp.ne.s32.totalorder %s56_s16, %s528_s20  ;;  %p534_p7 = scmp.lt.s32.totalorder %s528_s20, %s528_s20 }
  0x11   :  { %p535_p8 = por %p534_p7, %p533_p6 }
  0x13   :  { %p536_p9 = pnand %p535_p8, %p529_p5 }
  0x15   :  { %539 = shalt.err (!%p536_p9)
}
  0x16   :  { %58 = dma.hbm_to_vmem [thread:$0]  %s753_s3, 64, %s56_s16, [#allocation11]  }
  0x17   :  { %s618_s23 = smov [#allocation4]   ;;  %s619_s25 = smov [#allocation9]  }
  0x18   :  { %s25_s24 = sshll.u32 %s618_s23, 4  ;;  %s45_s26 = sshll.u32 %s619_s25, 4  ;;  %s26_s24 = int_to_ptr.vmem [resolvable:$true] %s25_s24  ;;  %s46_s26 = int_to_ptr.vmem [resolvable:$true] %s45_s26 }
  0x19   :  { %s548_s27 = scalar_lea.vmem %s26_s24, 64  ;;  %p553_p11 = scmp.lt.s32.totalorder %s26_s24, %s26_s24 }
  0x1a   :  { %p549_p10 = scmp.ne.s32.totalorder %s26_s24, %s548_s27  ;;  %p554_p12 = scmp.lt.s32.totalorder %s548_s27, %s548_s27 }
  0x1c   :  { %p555_p13 = por %p554_p12, %p553_p11 }
  0x1e   :  { %p556_p0 = pnand %p555_p13, %p549_p10 }
  0x20   :  { %559 = shalt.err (!%p556_p0)
}
  0x21   :  { %28 = dma.hbm_to_vmem [thread:$0]  %s750_s0, 64, %s26_s24, [#allocation5]  }
  0x22   :  { %s568_s29 = scalar_lea.vmem %s46_s26, 64  ;;  %p573_p2 = scmp.lt.s32.totalorder %s46_s26, %s46_s26 }
  0x23   :  { %p569_p1 = scmp.ne.s32.totalorder %s46_s26, %s568_s29  ;;  %p574_p3 = scmp.lt.s32.totalorder %s568_s29, %s568_s29 }
  0x25   :  { %p575_p4 = por %p574_p3, %p573_p2 }
  0x27   :  { %p576_p5 = pnand %p575_p4, %p569_p1 }
  0x29   :  { %579 = shalt.err (!%p576_p5)
}
  0x2a   :  { %48 = dma.hbm_to_vmem [thread:$0]  %s752_s2, 64, %s46_s26, [#allocation8]  }
  0x2b   :  { %s620_s11 = smov [#allocation12]  }
  0x2c   :  { %s65_s12 = sshll.u32 %s620_s11, 4  ;;  %s66_s12 = int_to_ptr.vmem [resolvable:$true] %s65_s12 }
  0x2d   :  { %s588_s13 = scalar_lea.vmem %s66_s12, 16  ;;  %s592_s14 = scalar_lea.vmem %s66_s12, 32 }
  0x2e   :  { %p589_p6 = scmp.ne.s32.totalorder %s66_s12, %s588_s13  ;;  %p593_p7 = scmp.lt.s32.totalorder %s66_s12, %s66_s12 }
  0x2f   :  { %p594_p8 = scmp.lt.s32.totalorder %s592_s14, %s588_s13 }
  0x31   :  { %p595_p9 = por %p594_p8, %p593_p7 }
  0x33   :  { %p596_p10 = pnand %p595_p9, %p589_p6 }
  0x35   :  { %599 = shalt.err (!%p596_p10)
}
  0x36   :  { %68 = dma.hbm_to_vmem [thread:$0]  %s754_s4, 16, %s66_s12, [#allocation11]  }
  0x37   :  { %608 = dma.done.wait [#allocation5], 64  }
  0x38   :  { %609 = vsyncadd [#allocation5], 4294967232 }
  0x39   :  { %610 = dma.done.wait [#allocation8], 128  }
  0x3a   :  { %611 = vsyncadd [#allocation8], 4294967168 }
  0x3b   :  { %612 = dma.done.wait [#allocation11], 80  }
  0x3c   :  { %613 = vsyncadd [#allocation11], 4294967216  ;;  %v157_v0 = vld [vmem:[%s755_s5] sm:$0xff]  ;;  %vm161_vm0 = vcmask 261120   ;;  %v158_v1 = vld [vmem:[%s755_s5 + $0x8] sm:$0xff]  ;;  %v621_v11 = vmov 0  }
  0x3d   :  { %v159_v2 = vmul.f32 %v157_v0, %v157_v0  ;;  %v160_v3 = vmul.f32 %v158_v1, %v158_v1  ;;  %v179_v6 = vld [vmem:[%s758_s8 + $0x18] sm:$0xff]  ;;  %v178_v7 = vld [vmem:[%s758_s8 + $0x10] sm:$0xff]  ;;  %v177_v8 = vld [vmem:[%s758_s8 + $0x8] sm:$0xff]  ;;  %480 = vset.pattern.permute.xlu0 %v621_v11  ;;  %481 = vset.pattern.permute.xlu1 %v621_v11  ;;  %v622_v24 = vmov 0.0   ;;  %vm113_vm5 = vcmask 122880   ;;  %s623_s2 = smov [#allocation13]  }
  0x3e   :  { %447 = vmatprep.subr.mxu0 %v179_v6  ;;  %v176_v9 = vld [vmem:[%s758_s8] sm:$0xff]  ;;  %v345_v22 = vld [vmem:[#allocation4] sm:$0xf]  ;;  %98 = vst [vmem:[#allocation2] sm:$0xf] %v622_v24  ;;  %vm125_vm6 = vcmask 123904  }
  0x3f   :  { %v162_v4 = vsel %vm161_vm0, %v159_v2, 0.0  ;;  %v165_v5 = vsel %vm161_vm0, %v160_v3, 0.0  ;;  %448 = vmatpush3.msra.mxu0 %v179_v6  ;;  %v290_v10 = vld [vmem:[%s757_s7] sm:$0xff]  ;;  %v348_v23 = vand.u32 2147483647, %v345_v22  ;;  %v347_v33 = vmax.f32 %v345_v22, 0.0 }
  0x40   :  { %163 = vadd.xlane.f32.xlu0 %v162_v4  ;;  %449 = vmatprep.subr.mxu0 %v178_v7  ;;  %99 = vst [vmem:[#allocation3] sm:$0xf] %v622_v24  ;;  %v346_v25 = vld [vmem:[#allocation7] sm:$0xf]  ;;  %v434_v61 = vld [vmem:[%s759_s9] ss:$0 sm:$0xff] }
  0x41   :  { %450 = vmatpush3.msra.mxu0 %v178_v7  ;;  %v349_v26 = vsub.f32 0.0, %v348_v23  ;;  %vm365_vm1 = vcmp.eq.f32.partialorder %v346_v25, 1.0  ;;  %v371_v42 = vsub.f32 1.0, %v346_v25  ;;  %vm368_vm2 = vcmp.lt.f32.partialorder %v346_v25, 1.0  ;;  %v109_v23 = vld [vmem:[#allocation10] sm:$0xf] }
  0x42   :  { %451 = vmatprep.subr.mxu0 %v177_v8  ;;  %v439_v28 = vsel %vm365_vm1, 1.0, %v622_v24  ;;  %v440_v52 = vsel %vm368_vm2, 1.0, %v622_v24  ;;  %v103_v7 = vlaneseq  ;;  %vm316_vm7 = vcmask 7168  }
  0x43   :  { %452 = vmatpush3.msra.mxu0 %v177_v8  ;;  %v350_v27 = vmul.f32 1.442695, %v349_v26  ;;  %v372_v44 = vmul.f32 %v371_v42, %v371_v42  ;;  %vm392_vm8 = vcmask 1043456  }
  0x44   :  { %166 = vadd.xlane.f32.xlu0 %v165_v5  ;;  %453 = vmatprep.subr.mxu0 %v176_v9 }
  0x45   :  { %454 = vmatpush3.msra.mxu0 %v176_v9  ;;  %v373_v48 = vmul.f32 %v372_v44, %v372_v44  ;;  %v374_v57 = vld [vmem:[#allocation2] sm:$0xf]  ;;  %v289_v9 = vand.u32 127, %v103_v7 }
  0x47   :  { %v385_v29 = vld [vmem:[#allocation3] sm:$0xf] }
  0x48   :  { %v386_v30 = vadd.f32 %v439_v28, %v385_v29 }
  0x4a   :  { %387 = vst [vmem:[#allocation3] sm:$0xf] %v386_v30 }
  0x5a   :  { %293 = vperm.xlu0 %480, %v290_v10  }
  0xc9   :  { %v164_v12 = vpop.xlane.xlu0 %163 }
  0xca   :  { %v168_v13 = vmax.f32 %v164_v12, 1e-24 }
  0xcc   :  { %482 = vrsqrt.f32 %v168_v13 }
  0xcd   :  { %v167_v14 = vpop.xlane.xlu0 %166 }
  0xce   :  { %v169_v15 = vmax.f32 %v167_v14, 1e-24 }
  0xd0   :  { %484 = vrsqrt.f32 %v169_v15 }
  0xd1   :  { %486 = vpow2.f32 %v350_v27 }
  0xd5   :  { %v294_v10 = vpop.permute.xlu0 %293 }
  0xd6   :  { %vm298_vm3 = vcmp.eq.s32.totalorder %v289_v9, %v294_v10 }
  0xd7   :  { %v437_v13 = vsel %vm298_vm3, 1.0, %v622_v24 }
  0xd9   :  { %v483_v16 = vpop.eup %482 }
  0xda   :  { %v172_v17 = vmul.f32 5.8592772, %v483_v16 }
  0xdc   :  { %v174_v18 = vmul.f32 %v172_v17, %v157_v0 }
  0xdd   :  { %v485_v19 = vpop.eup %484 }
  0xde   :  { %v173_v20 = vmul.f32 5.8592772, %v485_v19  ;;  %455 = vmatprep.mubr.msk.f32.mxu0 %vm161_vm0, %v174_v18  ;;  %v487_v31 = vpop.eup %486  ;;  %v104_v18 = vshrl.u32 %v103_v7, 7 }
  0xdf   :  { %v352_v32 = vadd.f32 1.0, %v487_v31  ;;  %v312_v31 = vld [vmem:[%s756_s6] sm:$0xff] }
  0xe0   :  { %v175_v21 = vmul.f32 %v173_v20, %v158_v1  ;;  %v291_v1 = vld [vmem:[%s757_s7 + $0x8] sm:$0xff]  ;;  %v105_v19 = vsub.s32 0, %v104_v18  ;;  %v100_v20 = vld [vmem:[#allocation12] sm:$0x1] }
  0xe1   :  { %488 = vlog2.f32 %v352_v32  ;;  %v114_v27 = vsel %vm113_vm5, %v100_v20, 0.0 }
  0xe2   :  { %456 = vmatmul.mubr.msk.f32.vlgmr.msra.gmra.mxu0 %vm161_vm0, %v175_v21  ;;  %v106_v21 = vrot.slane %v100_v20, %v105_v19 }
  0xe4   :  { %v110_v26 = vmul.f32 %v109_v23, %v106_v21 }
  0xee   :  { %v489_v34 = vpop.eup %488 }
  0xef   :  { %v354_v35 = vmul.f32 0.6931472, %v489_v34  ;;  %v331_v34 = vsel %vm316_vm7, %v312_v31, 0.0 }
  0xf1   :  { %v355_v36 = vadd.f32 %v354_v35, %v347_v33  ;;  %v313_v33 = vld [vmem:[%s756_s6 + $0x8] sm:$0xff] }
  0xf2   :  { %v332_v35 = vsel %vm316_vm7, %v313_v33, 0.0 }
  0xf3   :  { %v356_v37 = vsub.f32 %v345_v22, %v355_v36  ;;  %v359_v41 = vsub.f32 0.0, %v355_v36  ;;  %v101_v22 = vld [vmem:[#allocation9] sm:$0xf]  ;;  %v333_v36 = vadd.f32 %v332_v35, %v331_v34 }
  0xf4   :  { %v108_v25 = vmul.f32 %v106_v21, %v101_v22 }
  0xf5   :  { %v357_v38 = vmax.f32 %v356_v37, -9.2103405  ;;  %v360_v43 = vmax.f32 %v359_v41, -9.2103405  ;;  %v405_v37 = vld [vmem:[#allocation3] sm:$0xf] }
  0xf7   :  { %v358_v39 = vmin.f32 %v357_v38, -0.000100005  ;;  %v361_v45 = vmin.f32 %v360_v43, -0.000100005  ;;  %v406_v38 = vsel %vm392_vm8, %v405_v37, 0.0 }
  0xf9   :  { %v362_v40 = vmul.f32 1.442695, %v358_v39 }
  0xfb   :  { %490 = vpow2.f32 %v362_v40 }
 0x108   :  { %v491_v46 = vpop.eup %490 }
 0x109   :  { %v364_v47 = vsub.f32 1.0, %v491_v46  ;;  %v378_v49 = vmul.f32 %v491_v46, %v491_v46 }
 0x10b   :  { %v375_v50 = vmul.f32 %v364_v47, %v364_v47  ;;  %v379_v51 = vmul.f32 %v378_v49, %v361_v45 }
 0x10d   :  { %v376_v53 = vmul.f32 %v375_v50, %v358_v39  ;;  %v380_v54 = vmul.f32 %v379_v51, %v373_v48 }
 0x10f   :  { %v377_v55 = vmul.f32 %v439_v28, %v376_v53  ;;  %v381_v56 = vmul.f32 %v440_v52, %v380_v54  ;;  %v111_v28 = vsub.f32 %v108_v25, %v110_v26 }
 0x111   :  { %v382_v58 = vadd.f32 %v381_v56, %v377_v55  ;;  %v112_v29 = vand.u32 2147483647, %v111_v28 }
 0x113   :  { %v383_v59 = vadd.f32 %v382_v58, %v374_v57  ;;  %v126_v30 = vsel %vm125_vm6, %v112_v29, 0.0 }
 0x115   :  { %384 = vst [vmem:[#allocation2] sm:$0xf] %v383_v59 }
 0x1a2   :  { %v457_v60 = vpop.f32.mrf.mxu0 }
 0x1a3   :  { %v265_v0 = vadd.f32 %v457_v60, %v434_v61 }
 0x1a4   :  { %v259_v62 = vpop.f32.mrf.mxu0 }
 0x1a5   :  { %v260_v63 = vadd.f32 %v434_v61, %v259_v62  ;;  %v391_v62 = vld [vmem:[#allocation2] sm:$0xf] }
 0x1a7   :  { %268 = vmax.xlane.f32.xlu1 %v260_v63  ;;  %v304_v14 = vmul.f32 %v437_v13, %v260_v63 }
 0x1ab   :  { %270 = vmax.xlane.f32.xlu1 %v265_v0 }
 0x1bc   :  { %296 = vperm.xlu1 %481, %v291_v1  }
 0x230   :  { %v269_v2 = vpop.xlane.xlu1 %268 }
 0x231   :  { %v272_v3 = vsub.f32 %v260_v63, %v269_v2 }
 0x233   :  { %v274_v4 = vmul.f32 1.442695, %v272_v3 }
 0x234   :  { %v729_v5 = vpop.xlane.xlu1 %270 }
 0x235   :  { %492 = vpow2.f32 %v274_v4  ;;  %v273_v6 = vsub.f32 %v265_v0, %v729_v5 }
 0x237   :  { %v276_v8 = vmul.f32 1.442695, %v273_v6 }
 0x238   :  { %v297_v11 = vpop.permute.xlu1 %296 }
 0x239   :  { %494 = vpow2.f32 %v276_v8  ;;  %vm299_vm4 = vcmp.eq.s32.totalorder %v289_v9, %v297_v11 }
 0x23a   :  { %v438_v16 = vsel %vm299_vm4, 1.0, %v622_v24  ;;  %v141_v24 = vrot.slane %v112_v29, 2 }
 0x23b   :  { %v305_v17 = vmul.f32 %v438_v16, %v265_v0 }
 0x23c   :  { %v143_v32 = vsel %vm125_vm6, %v141_v24, 0.0 }
 0x242   :  { %v493_v12 = vpop.eup %492 }
 0x243   :  { %278 = vadd.xlane.f32.xlu1 %v493_v12 }
 0x246   :  { %v495_v15 = vpop.eup %494 }
 0x247   :  { %280 = vadd.xlane.f32.xlu0 %v495_v15  ;;  %306 = vadd.xlane.f32.xlu1 %v304_v14 }
 0x24b   :  { %308 = vadd.xlane.f32.xlu1 %v305_v17  ;;  %334 = vadd.xlane.f32.xlu0 %v333_v36 }
 0x24f   :  { %115 = vadd.xlane.f32.xlu1 %v114_v27  ;;  %407 = vadd.xlane.f32.xlu0 %v406_v38 }
 0x253   :  { %127 = vadd.xlane.f32.xlu1 %v126_v30 }
 0x257   :  { %144 = vadd.xlane.f32.xlu1 %v143_v32 }
 0x2cc   :  { %v279_v39 = vpop.xlane.xlu1 %278 }
 0x2cd   :  { %496 = vlog2.f32 %v279_v39 }
 0x2d0   :  { %v281_v40 = vpop.xlane.xlu0 %280  ;;  %v307_v41 = vpop.xlane.xlu1 %306 }
 0x2d1   :  { %498 = vlog2.f32 %v281_v40 }
 0x2d4   :  { %v309_v45 = vpop.xlane.xlu1 %308  ;;  %v335_v15 = vpop.xlane.xlu0 %334 }
 0x2d5   :  { %v336_v16 = vrot.slane %v335_v15, 4 }
 0x2d7   :  { %v337_v18 = vadd.f32 %v336_v16, %v335_v15 }
 0x2d8   :  { %v116_v50 = vpop.xlane.xlu1 %115  ;;  %v408_v17 = vpop.xlane.xlu0 %407 }
 0x2d9   :  { %v117_v51 = vrot.slane %v116_v50, 4  ;;  %v409_v19 = vrot.slane %v408_v17, 4  ;;  %v338_v20 = vrot.slane %v337_v18, 2 }
 0x2da   :  { %v497_v42 = vpop.eup %496 }
 0x2db   :  { %v283_v43 = vmul.f32 0.6931472, %v497_v42  ;;  %v118_v54 = vadd.f32 %v117_v51, %v116_v50  ;;  %v410_v21 = vadd.f32 %v409_v19, %v408_v17  ;;  %v339_v28 = vadd.f32 %v338_v20, %v337_v18 }
 0x2dc   :  { %v128_v56 = vpop.xlane.xlu1 %127 }
 0x2dd   :  { %v286_v44 = vadd.f32 %v283_v43, %v269_v2  ;;  %v119_v57 = vrot.slane %v118_v54, 2  ;;  %v129_v58 = vrot.slane %v128_v56, 4  ;;  %v411_v26 = vrot.slane %v410_v21, 2 }
 0x2de   :  { %v499_v46 = vpop.eup %498 }
 0x2df   :  { %v310_v47 = vsub.f32 %v286_v44, %v307_v41  ;;  %v285_v48 = vmul.f32 0.6931472, %v499_v46  ;;  %v130_v63 = vadd.f32 %v129_v58, %v128_v56  ;;  %v120_v0 = vadd.f32 %v119_v57, %v118_v54 }
 0x2e0   :  { %v145_v1 = vpop.xlane.xlu1 %144  ;;  %v412_v32 = vadd.f32 %v411_v26, %v410_v21 }
 0x2e1   :  { %v287_v49 = vadd.f32 %v285_v48, %v729_v5  ;;  %v314_v52 = vmul.f32 %v312_v31, %v310_v47  ;;  %v131_v2 = vrot.slane %v130_v63, 2  ;;  %v146_v3 = vrot.slane %v145_v1, 4 }
 0x2e2   :  { %v121_v4 = vrot.slane %v120_v0, 1  ;;  %v393_v5 = vsel %vm392_vm8, %v391_v62, 0.0  ;;  %v413_v39 = vrot.slane %v412_v32, 1 }
 0x2e3   :  { %v311_v53 = vsub.f32 %v287_v49, %v309_v45  ;;  %v317_v59 = vsel %vm316_vm7, %v314_v52, 0.0  ;;  %v147_v6 = vadd.f32 %v146_v3, %v145_v1  ;;  %v132_v8 = vadd.f32 %v131_v2, %v130_v63 }
 0x2e4   :  { %v122_v7 = vadd.f32 %v121_v4, %v120_v0  ;;  %v414_v42 = vadd.f32 %v413_v39, %v412_v32 }
 0x2e5   :  { %v315_v55 = vmul.f32 %v313_v33, %v311_v53  ;;  %v148_v9 = vrot.slane %v147_v6, 2  ;;  %v133_v10 = vrot.slane %v132_v8, 1  ;;  %v340_v33 = vrot.slane %v339_v28, 1 }
 0x2e6   :  { %458 = vpush %v122_v7 }
 0x2e7   :  { %v318_v60 = vsel %vm316_vm7, %v315_v55, 0.0  ;;  %v134_v11 = vadd.f32 %v133_v10, %v132_v8  ;;  %v149_v12 = vadd.f32 %v148_v9, %v147_v6  ;;  %v341_v38 = vadd.f32 %v340_v33, %v339_v28 }
 0x2e8   :  { %v319_v61 = vadd.f32 %v318_v60, %v317_v59 }
 0x2e9   :  { %460 = vpush %v134_v11  ;;  %v150_v13 = vrot.slane %v149_v12, 1 }
 0x2ea   :  { %320 = vadd.xlane.f32.xlu1 %v319_v61 }
 0x2eb   :  { %v151_v14 = vadd.f32 %v150_v13, %v149_v12 }
 0x2ed   :  { %462 = vpush %v151_v14 }
 0x2ee   :  { %394 = vadd.xlane.f32.xlu1 %v393_v5 }
 0x317   :  { %s459_s6 = spop %458 }
 0x318   :  { %s124_s30 = smul.f32 2.0, %s459_s6 }
 0x31a   :  { %139 = sst [smem:[#allocation13 + $0x3]] %s124_s30  ;;  %s461_s11 = spop %460 }
 0x31b   :  { %156 = sst [smem:[#allocation13 + $0x5]] %s124_s30 }
 0x31c   :  { %137 = sst [smem:[#allocation13 + $0x2]] %s461_s11 }
 0x31e   :  { %s463_s12 = spop %462 }
 0x31f   :  { %154 = sst [smem:[#allocation13 + $0x4]] %s463_s12 }
 0x373   :  { %v321_v22 = vpop.xlane.xlu1 %320 }
 0x374   :  { %v322_v23 = vrot.slane %v321_v22, 4 }
 0x376   :  { %v323_v25 = vadd.f32 %v322_v23, %v321_v22 }
 0x377   :  { %v395_v27 = vpop.xlane.xlu1 %394 }
 0x378   :  { %v324_v29 = vrot.slane %v323_v25, 2  ;;  %v396_v30 = vrot.slane %v395_v27, 4 }
 0x37a   :  { %v397_v24 = vadd.f32 %v396_v30, %v395_v27  ;;  %v325_v31 = vadd.f32 %v324_v29, %v323_v25 }
 0x37c   :  { %v398_v34 = vrot.slane %v397_v24, 2  ;;  %v326_v35 = vrot.slane %v325_v31, 1 }
 0x37e   :  { %v399_v36 = vadd.f32 %v398_v34, %v397_v24  ;;  %v327_v37 = vadd.f32 %v326_v35, %v325_v31 }
 0x380   :  { %464 = vpush %v327_v37  ;;  %v400_v40 = vrot.slane %v399_v36, 1 }
 0x381   :  { %466 = vpush %v341_v38 }
 0x382   :  { %v401_v41 = vadd.f32 %v400_v40, %v399_v36 }
 0x384   :  { %468 = vpush %v401_v41 }
 0x385   :  { %470 = vpush %v414_v42 }
 0x3b1   :  { %s465_s13 = spop %464 }
 0x3b2   :  { %330 = sst [smem:[#allocation13 + $0x6]] %s465_s13  ;;  %s467_s14 = spop %466 }
 0x3b3   :  { %344 = sst [smem:[#allocation13 + $0x7]] %s467_s14 }
 0x3b5   :  { %s469_s0 = spop %468 }
 0x3b6   :  { %404 = sst [smem:[#allocation13]] %s469_s0  ;;  %s471_s15 = spop %470 }
 0x3b7   :  { %417 = sst [smem:[#allocation13 + $0x1]] %s471_s15 }
 0x3b8   :  { %425 = dma.smem_to_hbm %s623_s2, 16, %s760_s10, [#allocation6]  }
 0x3b9   :  { %614 = dma.done.wait [#allocation6], 16  }
 0x3ba   :  { %615 = vsyncadd [#allocation6], 4294967280 }
 0x3bb   :  { %429 = sfence }
 0x3bc   :  { %430 = vsyncpa [#allocation5], 1 }
 0x3bd   :  { %431 = vsyncpa [#allocation8], 1 }
 0x3be   :  { %432 = vsyncpa [#allocation11], 1 }
 0x3bf   :  { %433 = vsyncpa [#allocation6], 1 }

</bundles_post_ra>
